<compile_context>
chip_gen: v6e
topology: v6e:2x2x1
jax: 0.10.0
libtpu: 0.0.40
codegen_flags: <defaults>
</compile_context>

<pallas_src>
import jax
import jax.numpy as jnp
from jax.experimental import pallas as pl
from jax.experimental.pallas import tpu as pltpu


_LANE_CHOICES = (2048, 1024, 512, 256, 128)   # lane widths, all multiples of 128
_TILE_BYTES = 4 * 1024 * 1024                 # per-buffer VMEM tile target (4 MiB)
_VMEM_LIMIT_BYTES = 24 * 1024 * 1024          # explicit scoped-VMEM budget; fits
                                              # v5e/v6e/v7x and leaves headroom


def _grad_reverse_kernel(alpha_ref, g_ref, o_ref):
    # grad_in = -alpha * grad_out.  alpha lives in SMEM as f32; negate + cast
    # it once to the gradient dtype so the tile-wide VPU multiply stays in the
    # native dtype (no f32 widen/narrow of the whole tile for bf16 grads).
    neg_alpha = (-alpha_ref[0, 0]).astype(o_ref.dtype)
    o_ref[...] = g_ref[...] * neg_alpha


def _round_up(x, m):
    return ((x + m - 1) // m) * m


def _sublane_multiple(dtype):
    # f32 -> 8, bf16/f16 -> 16, int8/fp8 -> 32: packed dtypes need more rows
    # per vreg to keep every store a full-width unmasked vst.
    return max(8, 32 // jnp.dtype(dtype).itemsize)


def _pick_lane_width(total):
    for lw in _LANE_CHOICES:
        if total % lw == 0:
            return lw
    return None


def _pick_tm(rows, tm_cap, sub):
    if rows <= sub:
        return rows                    # single full-extent block, grid=(1,)
    # Force >= 2 grid steps so v7x's second TensorCore has work on medium-size
    # gradients; neutral on single-TC v5e/v6e (one extra ~0.35us step).
    bound = min(tm_cap, _round_up(pl.cdiv(rows, 2), sub))
    bound = max(sub, (bound // sub) * sub)
    # Prefer a tm that divides rows exactly (no masked partial last block),
    # but never shrink the tile by more than 2x looking for one.
    cand = bound
    floor = max(sub, bound // 2)
    while cand >= floor:
        if rows % cand == 0:
            return cand
        cand -= sub
    return bound


def _grad_reverse_pallas(g, alpha):
    """Backward of the gradient-reversal layer: returns -alpha * g."""
    if g.size == 0:
        return g

    alpha_arr = jnp.reshape(jnp.asarray(alpha, dtype=jnp.float32), (1, 1))
    orig_shape, dtype = g.shape, g.dtype
    total = g.size

    # Lane-dense 2D view: pick a lane width that divides the element count, or
    # pad the flattened gradient to a multiple of 128/512 lanes so every store
    # is a full-width vst and the grid pipelines normally (no un-tiled fallback).
    lw = _pick_lane_width(total)
    flat = g.reshape(total)
    if lw is None:
        lw = 512 if total >= 512 else 128
        flat = jnp.pad(flat, (0, _round_up(total, lw) - total))
    padded_total = flat.size
    rows = padded_total // lw
    g2 = flat.reshape(rows, lw)

    sub = _sublane_multiple(dtype)
    itemsize = jnp.dtype(dtype).itemsize
    # Tile rows so one (TM, LW) buffer stays <= ~4 MiB; with double-buffered
    # input + output that is ~16 MiB of VMEM, within the explicit 24 MiB limit.
    tm_cap = max(sub, ((_TILE_BYTES // (lw * itemsize)) // sub) * sub)
    tm = _pick_tm(rows, tm_cap, sub)
    grid = (pl.cdiv(rows, tm),)

    out = pl.pallas_call(
        _grad_reverse_kernel,
        out_shape=jax.ShapeDtypeStruct((rows, lw), dtype),
        grid=grid,
        in_specs=[
            pl.BlockSpec(memory_space=pltpu.MemorySpace.SMEM),   # alpha scalar
            pl.BlockSpec((tm, lw), lambda i: (i, 0)),            # gradient tile
        ],
        out_specs=pl.BlockSpec((tm, lw), lambda i: (i, 0)),
        input_output_aliases={1: 0},      # negate-scale the gradient in place
        compiler_params=pltpu.CompilerParams(
            dimension_semantics=("parallel",),
            vmem_limit_bytes=_VMEM_LIMIT_BYTES),
    )(alpha_arr, g2)

    if padded_total != total:
        out = out.reshape(padded_total)[:total]
    return out.reshape(orig_shape)


@jax.custom_vjp
def _grad_reverse(x, alpha):
    # Forward of GradReverse: identity (x.view_as(x)).  No pallas_call here —
    # a copy kernel would be 2x array-size of pointless HBM traffic.
    del alpha
    return x


def _grad_reverse_fwd(x, alpha):
    return x, alpha


def _grad_reverse_bwd(alpha, g):
    # PyTorch returns (grad_output.neg() * alpha, None); a zero cotangent for
    # alpha is the JAX analogue of "no gradient".
    return _grad_reverse_pallas(g, alpha), jnp.zeros_like(alpha)


_grad_reverse.defvjp(_grad_reverse_fwd, _grad_reverse_bwd)


def adversarial_module(x, alpha=1.0):
    """Equivalent of AdversarialModule(alpha).forward(x)."""
    return _grad_reverse(x, jnp.asarray(alpha, dtype=jnp.float32))


if __name__ == "__main__":
    key = jax.random.PRNGKey(0)
    # Small NCHW input consistent with the module: batch=2, channels=4, 16x16.
    x = jax.random.normal(key, (2, 4, 16, 16), dtype=jnp.float32)
    alpha = 0.75

    # Forward: must be identity.
    y = jax.block_until_ready(adversarial_module(x, alpha))
    assert y.shape == x.shape and y.dtype == x.dtype
    assert bool(jnp.allclose(y, x)), "forward is not identity"

    # Backward (eager): d/dx sum(module(x)) must be -alpha everywhere.
    g = jax.grad(lambda v: jnp.sum(adversarial_module(v, alpha)))(x)
    g = jax.block_until_ready(g)
    assert bool(jnp.allclose(g, -alpha * jnp.ones_like(x))), "backward mismatch"

    # Backward (jit, runtime alpha): same Mosaic kernel for any alpha value.
    grad_fn = jax.jit(jax.grad(lambda v, a: jnp.sum(adversarial_module(v, a))))
    g2 = jax.block_until_ready(grad_fn(x, 1.5))
    assert bool(jnp.allclose(g2, -1.5 * jnp.ones_like(x))), "jit backward mismatch"

    # Padded path: element count (2*4*15*15 = 1800) is not a multiple of 128.
    x_odd = jax.random.normal(key, (2, 4, 15, 15), dtype=jnp.float32)
    g_odd = jax.block_until_ready(
        jax.grad(lambda v: jnp.sum(adversarial_module(v, 0.5)))(x_odd))
    assert bool(jnp.allclose(g_odd, -0.5 * jnp.ones_like(x_odd))), "padded backward mismatch"

    # bf16 gradients: multiply runs in the native dtype.
    x_bf = x.astype(jnp.bfloat16)
    g_bf = jax.block_until_ready(
        jax.grad(lambda v: jnp.sum(adversarial_module(v, 0.5)))(x_bf))
    assert g_bf.dtype == jnp.bfloat16
    assert bool(jnp.allclose(g_bf.astype(jnp.float32),
                             -0.5 * jnp.ones(x.shape, jnp.float32))), "bf16 backward mismatch"

    print("KERNEL_OK")
</pallas_src>

<mosaic_0001>
module attributes {stable_mosaic.version = 11 : i64} {
  func.func @_grad_reverse_kernel(%arg0: i32, %arg1: memref<1x1xf32, #tpu.memory_space<smem>>, %arg2: memref<1x2048xf32, #tpu.memory_space<vmem>>, %arg3: memref<1x2048xf32, #tpu.memory_space<vmem>>) attributes {dimension_semantics = [#tpu.dimension_semantics<parallel>], iteration_bounds = array<i64: 1>, scalar_prefetch = 0 : i64, scratch_operands = 0 : i64, tpu.core_type = #tpu.core_type<tc>, window_params = [{transform_indices = @transform_0, window_bounds = array<i64: 1, 1>}, {transform_indices = @transform_1, window_bounds = array<i64: 1, 2048>}, {transform_indices = @transform_2, window_bounds = array<i64: 1, 2048>}]} {
    %c0 = arith.constant 0 : index
    %c0_0 = arith.constant 0 : index
    %0 = memref.load %arg1[%c0, %c0_0] : memref<1x1xf32, #tpu.memory_space<smem>>
    %cst = arith.constant 0.000000e+00 : f32
    %1 = arith.subf %cst, %0 : f32
    %c0_1 = arith.constant 0 : index
    %c0_2 = arith.constant 0 : index
    %2 = vector.load %arg2[%c0_1, %c0_2] : memref<1x2048xf32, #tpu.memory_space<vmem>>, vector<1x2048xf32>
    %3 = vector.broadcast %1 : f32 to vector<1x2048xf32>
    %4 = arith.mulf %2, %3 : vector<1x2048xf32>
    %c0_3 = arith.constant 0 : index
    %c0_4 = arith.constant 0 : index
    %5 = vector.load %arg3[%c0_3, %c0_4] : memref<1x2048xf32, #tpu.memory_space<vmem>>, vector<1x2048xf32>
    tpu.vector_store %arg3[%c0_3, %c0_4], %4 {strides = array<i32>} : memref<1x2048xf32, #tpu.memory_space<vmem>>, vector<1x2048xf32>,
    return
  }
  func.func @transform_0(%arg0: i32) -> (i32, i32) {
    %c0_i32 = arith.constant 0 : i32
    %c0_i32_0 = arith.constant 0 : i32
    %c0_i32_1 = arith.constant 0 : i32
    return %c0_i32, %c0_i32_0 : i32, i32
  }
  func.func @transform_1(%arg0: i32) -> (i32, i32) {
    %c0_i32 = arith.constant 0 : i32
    %c0_i32_0 = arith.constant 0 : i32
    return %arg0, %c0_i32 : i32, i32
  }
  func.func @transform_2(%arg0: i32) -> (i32, i32) {
    %c0_i32 = arith.constant 0 : i32
    %c0_i32_0 = arith.constant 0 : i32
    return %arg0, %c0_i32 : i32, i32
  }
}

</mosaic_0001>

<bundles_post_ra>
// kernel: tpu_custom_call.1
= control target key start
LH: loop header
LB: loop body
LE: loop exit
PB: predicated region body
PF: predicated region fallthrough
CT: control target
= control target key end

     0   :  { %8 = vsyncpa [#allocation4], 0  ;;  %s121_s0 = inlined_call_operand.<no memory space> [shape: f32[1,1], index: 0, kind: input, shape index: {}]   ;;  %s122_s1 = inlined_call_operand.hbm [shape: f32[1,2048], index: 1, kind: input, shape index: {}, may-alias: {1,2}]   ;;  %s123_s2 = inlined_call_operand.hbm [shape: f32[1,2048], index: 2, kind: output, shape index: {}, may-alias: {1,2}]  }
   0x1   :  { %9 = vsyncpa [#allocation5], 0  ;;  %s95_s9 = smov [#allocation3]  }
   0x2   :  { %s18_s10 = sshll.u32 %s95_s9, 4  ;;  %s19_s10 = int_to_ptr.vmem [resolvable:$true] %s18_s10 }
   0x3   :  { %s59_s11 = scalar_lea.vmem %s19_s10, 256  ;;  %p64_p1 = scmp.lt.s32.totalorder %s19_s10, %s19_s10 }
   0x4   :  { %p60_p0 = scmp.ne.s32.totalorder %s19_s10, %s59_s11  ;;  %p65_p2 = scmp.lt.s32.totalorder %s59_s11, %s59_s11 }
   0x6   :  { %p66_p3 = por %p65_p2, %p64_p1 }
   0x8   :  { %p67_p4 = pnand %p66_p3, %p60_p0 }
   0xa   :  { %70 = shalt.err (!%p67_p4)
}
   0xb   :  { %21 = dma.hbm_to_vmem [thread:$0]  %s122_s1, 256, %s19_s10, [#allocation4]  }
   0xc   :  { %91 = dma.done.wait [#allocation4], 256  }
   0xd   :  { %92 = vsyncadd [#allocation4], 4294967040  ;;  %s26_s16 = ssub.f32 0.0, %s121_s0  ;;  %s96_s17 = smov [#allocation6]   ;;  %v27_v1 = vld [vmem:[#allocation3] sm:$0xff]  ;;  %v28_v2 = vld [vmem:[#allocation3 + $0x8] sm:$0xff] }
   0xe   :  { %s40_s18 = sshll.u32 %s96_s17, 4  ;;  %s41_s18 = int_to_ptr.vmem [resolvable:$true] %s40_s18 }
   0xf   :  { %v29_v0 = vstv %s26_s16  ;;  %s71_s19 = scalar_lea.vmem %s41_s18, 256  ;;  %p76_p6 = scmp.lt.s32.totalorder %s41_s18, %s41_s18 }
  0x10   :  { %v30_v3 = vmul.f32 %v29_v0, %v27_v1  ;;  %v31_v4 = vmul.f32 %v29_v0, %v28_v2  ;;  %p72_p5 = scmp.ne.s32.totalorder %s41_s18, %s71_s19  ;;  %p77_p7 = scmp.lt.s32.totalorder %s71_s19, %s71_s19 }
  0x12   :  { %32 = vst [vmem:[#allocation6] sm:$0xff] %v30_v3  ;;  %33 = vst [vmem:[#allocation6 + $0x8] sm:$0xff] %v31_v4  ;;  %p78_p8 = por %p77_p7, %p76_p6 }
  0x14   :  { %p79_p9 = pnand %p78_p8, %p72_p5 }
  0x16   :  { %82 = shalt.err (!%p79_p9)
}
  0x17   :  { %43 = dma.vmem_to_hbm [thread:$0]  %s41_s18, 256, %s123_s2, [#allocation5]  }
  0x18   :  { %93 = dma.done.wait [#allocation5], 256  }
  0x19   :  { %94 = vsyncadd [#allocation5], 4294967040 }
  0x1a   :  { %47 = vsyncpa [#allocation4], 1 }
  0x1b   :  { %48 = vsyncpa [#allocation5], 1 }

</bundles_post_ra>
